<compile_context>
chip_gen: v7x
topology: tpu7x:2x2x1
jax: 0.10.0
libtpu: 0.0.40
codegen_flags: <defaults>
</compile_context>

<pallas_src>
import functools

import jax
import jax.numpy as jnp
from jax.experimental import pallas as pl
from jax.experimental.pallas import tpu as pltpu


def _int_pow(x, k):
    """x**k for a non-negative Python int k via repeated multiplies (no EUP pow)."""
    if k == 0:
        return jnp.ones_like(x)
    result = None
    base = x
    while k:
        if k & 1:
            result = base if result is None else result * base
        k >>= 1
        if k:
            base = base * base
    return result


def _poly_focal_kernel(logits_ref, labels_ref, out_ref, acc_ref, *,
                       gamma, alpha, epsilon, n_valid, last_tile_start, need_mask):
    si = pl.program_id(1)          # n-split (parallel; feeds v7x's 2nd TC when b == 1)
    ni = pl.program_id(2)          # reduction tiles along n (arbitrary, innermost)

    @pl.when(ni == 0)
    def _():
        acc_ref[...] = jnp.zeros_like(acc_ref)

    x = logits_ref[0].astype(jnp.float32)       # (c, tile_n), n on the lane axis
    lab = labels_ref[0]                         # (1, tile_n) int32

    # Boolean one-hot along the class (sublane) axis; selects instead of float muls.
    cls = jax.lax.broadcasted_iota(jnp.int32, x.shape, 0)
    y = cls == lab                              # (c, tile_n) bool

    # Shared transcendentals: e and log1p(e) feed both BCE-with-logits and sigmoid.
    e = jnp.exp(-jnp.abs(x))
    log1p_e = jnp.log1p(e)
    bce = jnp.maximum(x, 0.0) - jnp.where(y, x, 0.0) + log1p_e
    # sigmoid(x) = exp(min(x, 0) - log1p(exp(-|x|)))  -- reuses log1p_e, no divide.
    p = jnp.exp(jnp.minimum(x, 0.0) - log1p_e)

    one_minus_pt = jnp.where(y, 1.0 - p, p)     # == 1 - pt, already in [0, 1]

    if float(gamma).is_integer() and gamma >= 0:
        pow_g = _int_pow(one_minus_pt, int(gamma))
    else:
        pow_g = jnp.power(one_minus_pt, gamma)

    alpha_t = jnp.where(y, alpha, 1.0 - alpha)
    # poly = alpha_t*bce*(1-pt)^g + eps*(1-pt)^(g+1)
    #      = (1-pt)^g * (alpha_t*bce + eps*(1-pt))          (factored pow_g)
    tail = one_minus_pt if epsilon == 1.0 else epsilon * one_minus_pt
    poly = pow_g * (alpha_t * bce + tail)

    if need_mask:
        is_last = jnp.logical_and(si == pl.num_programs(1) - 1,
                                  ni == pl.num_programs(2) - 1)

        @pl.when(jnp.logical_not(is_last))
        def _():
            acc_ref[...] += poly                # steady state: zero mask math

        @pl.when(is_last)
        def _():
            # Only the ragged tail tile pays the iota/compare/select.
            col = jax.lax.broadcasted_iota(jnp.int32, poly.shape, 1) + last_tile_start
            acc_ref[...] += jnp.where(col < n_valid, poly, 0.0)
    else:
        acc_ref[...] += poly                    # pure VPU elementwise accumulate

    @pl.when(ni == pl.num_programs(2) - 1)
    def _():
        # One cross-lane/sublane reduce per (batch row, n-split).
        out_ref[...] = jnp.sum(acc_ref[...]).reshape(1, 1, 1)


def _pick_tile_n(n, c, itemsize, target_bytes=4 << 20, vmem_budget_bytes=40 << 20):
    """Lane-dense n tile: sized by bytes, VMEM-budgeted, prefers exact divisors of n."""
    # Per n-column VMEM cost: double-buffered logits block + f32 accumulator + labels.
    per_col = 2 * c * itemsize + 4 * c + 2 * 4
    max_cols = max(128, (vmem_budget_bytes // per_col) // 128 * 128)
    # TODO(synk): add a class-tiling grid axis when c alone exceeds the VMEM budget.

    if n <= 128:
        return n                                     # single tiny full-extent block
    if n <= max_cols and n * c * itemsize <= 2 * target_bytes:
        return n                                     # whole n in one block, no mask

    t = (target_bytes // max(1, c * itemsize)) // 128 * 128
    t = int(max(128, min(t, max_cols, (n // 128) * 128)))

    if n % 128 == 0:
        blocks = n // 128
        for d in range(t // 128, 0, -1):             # largest divisor <= target size
            if blocks % d == 0 and 2 * d * 128 >= t:  # accept if >= target/2
                return d * 128                        # exact divisor -> no tail mask
    return t                                          # ragged tail masked in-kernel


def poly_focal_loss(y_pred, y, *, gamma, alpha, epsilon,
                    target_block_bytes=4 << 20, vmem_budget_bytes=40 << 20):
    """y_pred: (b, c, n) float logits (native layout); y: (b, n) int labels.

    Returns the scalar mean poly-focal loss (float32), matching the PyTorch module.
    """
    b, c, n = y_pred.shape
    labels = y.reshape(b, 1, n).astype(jnp.int32)

    itemsize = jnp.dtype(y_pred.dtype).itemsize
    tile_n = _pick_tile_n(n, c, itemsize, target_block_bytes, vmem_budget_bytes)
    nt = -(-n // tile_n)                         # number of n tiles (ceil div)
    need_mask = (n % tile_n) != 0

    # Give v7x's second TensorCore work when the batch axis alone can't (b == 1).
    n_split = 2 if (b == 1 and nt % 2 == 0 and nt >= 2) else 1
    nt_inner = nt // n_split

    kernel = functools.partial(
        _poly_focal_kernel,
        gamma=float(gamma), alpha=float(alpha), epsilon=float(epsilon),
        n_valid=n, last_tile_start=(nt - 1) * tile_n, need_mask=need_mask)

    partial = pl.pallas_call(
        kernel,
        out_shape=jax.ShapeDtypeStruct((b * n_split, 1, 1), jnp.float32),
        grid_spec=pltpu.PrefetchScalarGridSpec(
            num_scalar_prefetch=0,
            grid=(b, n_split, nt_inner),
            in_specs=[
                pl.BlockSpec((1, c, tile_n),
                             lambda bi, si, ni: (bi, 0, si * nt_inner + ni)),  # logits
                pl.BlockSpec((1, 1, tile_n),
                             lambda bi, si, ni: (bi, 0, si * nt_inner + ni)),  # labels
            ],
            out_specs=pl.BlockSpec((1, 1, 1),
                                   lambda bi, si, ni: (bi * n_split + si, 0, 0)),
            scratch_shapes=[pltpu.VMEM((c, tile_n), jnp.float32)],   # vector accumulator
        ),
        compiler_params=pltpu.CompilerParams(
            dimension_semantics=("parallel", "parallel", "arbitrary"),
            vmem_limit_bytes=48 * 1024 * 1024),     # <= v7x's 64 MiB physical per TC
    )(y_pred, labels)

    return jnp.sum(partial) / (b * n * c)


def _reference(y_pred, y, gamma, alpha, epsilon):
    """Direct transcription of the PyTorch module (includes the alpha_t factor)."""
    yp = jnp.transpose(y_pred, (0, 2, 1)).astype(jnp.float32)
    p = jax.nn.sigmoid(yp)
    oh = jax.nn.one_hot(y, yp.shape[2], dtype=yp.dtype)
    bce = jnp.maximum(yp, 0.0) - yp * oh + jnp.log1p(jnp.exp(-jnp.abs(yp)))
    pt = oh * p + (1 - oh) * (1 - p)
    focal = bce * (1 - pt) ** gamma
    alpha_t = oh * alpha + (1 - oh) * (1 - alpha)
    focal = alpha_t * focal                       # the PyTorch module applies alpha_t
    poly = focal + epsilon * (1 - pt) ** (gamma + 1)
    return jnp.mean(poly)


if __name__ == "__main__":
    gamma, alpha, epsilon = 2.0, 0.25, 1.0

    key = jax.random.PRNGKey(0)
    k1, k2 = jax.random.split(key)
    b, c, n = 2, 32, 8                      # (batch, classes, sequence)
    y_pred = jax.random.normal(k1, (b, c, n), dtype=jnp.float32)
    y = jax.random.randint(k2, (b, n), 0, c, dtype=jnp.int32)

    loss = poly_focal_loss(y_pred, y, gamma=gamma, alpha=alpha, epsilon=epsilon)
    loss = jax.block_until_ready(loss)

    ref = _reference(y_pred, y, gamma, alpha, epsilon)
    assert jnp.allclose(loss, ref, rtol=1e-4, atol=1e-6), (loss, ref)

    print("KERNEL_OK")
</pallas_src>

<mosaic_0001>
module attributes {stable_mosaic.version = 11 : i64} {
  func.func @_poly_focal_kernel(%arg0: i32, %arg1: i32, %arg2: i32, %arg3: memref<1x32x8xf32, #tpu.memory_space<vmem>>, %arg4: memref<1x1x8xi32, #tpu.memory_space<vmem>>, %arg5: memref<1x1x1xf32, #tpu.memory_space<vmem>>, %arg6: memref<32x8xf32, #tpu.memory_space<vmem>>) attributes {dimension_semantics = [#tpu.dimension_semantics<parallel>, #tpu.dimension_semantics<parallel>, #tpu.dimension_semantics<arbitrary>], iteration_bounds = array<i64: 2, 1, 1>, scalar_prefetch = 0 : i64, scratch_operands = 1 : i64, tpu.core_type = #tpu.core_type<tc>, window_params = [{transform_indices = @transform_0, window_bounds = array<i64: 1, 32, 8>}, {transform_indices = @transform_1, window_bounds = array<i64: 1, 1, 8>}, {transform_indices = @transform_2, window_bounds = array<i64: 1, 1, 1>}]} {
    %c0_i32 = arith.constant 0 : i32
    %0 = arith.cmpi eq, %arg2, %c0_i32 : i32
    %1 = arith.extui %0 : i1 to i32
    %c0_i32_0 = arith.constant 0 : i32
    %2 = arith.cmpi ne, %1, %c0_i32_0 : i32
    scf.if %2 {
      %cst_18 = arith.constant 0.000000e+00 : f32
      %41 = vector.broadcast %cst_18 : f32 to vector<32x8xf32>
      %c0_19 = arith.constant 0 : index
      %c0_20 = arith.constant 0 : index
      %42 = vector.load %arg6[%c0_19, %c0_20] : memref<32x8xf32, #tpu.memory_space<vmem>>, vector<32x8xf32>
      tpu.vector_store %arg6[%c0_19, %c0_20], %41 {strides = array<i32>} : memref<32x8xf32, #tpu.memory_space<vmem>>, vector<32x8xf32>,
    } else {
    }
    %c0 = arith.constant 0 : index
    %c0_1 = arith.constant 0 : index
    %c0_2 = arith.constant 0 : index
    %3 = vector.load %arg3[%c0, %c0_1, %c0_2] : memref<1x32x8xf32, #tpu.memory_space<vmem>>, vector<1x32x8xf32>
    %4 = vector.shape_cast %3 : vector<1x32x8xf32> to vector<32x8xf32>
    %c0_3 = arith.constant 0 : index
    %c0_4 = arith.constant 0 : index
    %c0_5 = arith.constant 0 : index
    %5 = vector.load %arg4[%c0_3, %c0_4, %c0_5] : memref<1x1x8xi32, #tpu.memory_space<vmem>>, vector<1x1x8xi32>
    %6 = vector.shape_cast %5 : vector<1x1x8xi32> to vector<1x8xi32>
    %7 = tpu.iota {dimensions = array<i32: 0>} : vector<32x8xi32>
    %8 = vector.broadcast %6 : vector<1x8xi32> to vector<32x8xi32>
    %9 = arith.cmpi eq, %7, %8 : vector<32x8xi32>
    %10 = math.absf %4 : vector<32x8xf32>
    %cst = arith.constant 0.000000e+00 : f32
    %11 = vector.broadcast %cst : f32 to vector<32x8xf32>
    %12 = arith.subf %11, %10 : vector<32x8xf32>
    %13 = math.exp %12 : vector<32x8xf32>
    %14 = math.log1p %13 : vector<32x8xf32>
    %cst_6 = arith.constant 0.000000e+00 : f32
    %15 = vector.broadcast %cst_6 : f32 to vector<32x8xf32>
    %16 = arith.maximumf %4, %15 : vector<32x8xf32>
    %cst_7 = arith.constant 0.000000e+00 : f32
    %17 = vector.broadcast %cst_7 : f32 to vector<32x8xf32>
    %18 = arith.select %9, %4, %17 : vector<32x8xi1>, vector<32x8xf32>
    %19 = arith.subf %16, %18 : vector<32x8xf32>
    %20 = arith.addf %19, %14 : vector<32x8xf32>
    %cst_8 = arith.constant 0.000000e+00 : f32
    %21 = vector.broadcast %cst_8 : f32 to vector<32x8xf32>
    %22 = arith.minimumf %4, %21 : vector<32x8xf32>
    %23 = arith.subf %22, %14 : vector<32x8xf32>
    %24 = math.exp %23 : vector<32x8xf32>
    %cst_9 = arith.constant 1.000000e+00 : f32
    %25 = vector.broadcast %cst_9 : f32 to vector<32x8xf32>
    %26 = arith.subf %25, %24 : vector<32x8xf32>
    %27 = arith.select %9, %26, %24 : vector<32x8xi1>, vector<32x8xf32>
    %28 = arith.mulf %27, %27 : vector<32x8xf32>
    %cst_10 = arith.constant 2.500000e-01 : f32
    %cst_11 = arith.constant 7.500000e-01 : f32
    %29 = vector.broadcast %cst_10 : f32 to vector<32x8xf32>
    %30 = vector.broadcast %cst_11 : f32 to vector<32x8xf32>
    %31 = arith.select %9, %29, %30 : vector<32x8xi1>, vector<32x8xf32>
    %32 = arith.mulf %31, %20 : vector<32x8xf32>
    %33 = arith.addf %32, %27 : vector<32x8xf32>
    %34 = arith.mulf %28, %33 : vector<32x8xf32>
    %c0_12 = arith.constant 0 : index
    %c0_13 = arith.constant 0 : index
    %35 = vector.load %arg6[%c0_12, %c0_13] : memref<32x8xf32, #tpu.memory_space<vmem>>, vector<32x8xf32>
    %36 = arith.addf %35, %34 : vector<32x8xf32>
    %c0_14 = arith.constant 0 : index
    %c0_15 = arith.constant 0 : index
    %37 = vector.load %arg6[%c0_14, %c0_15] : memref<32x8xf32, #tpu.memory_space<vmem>>, vector<32x8xf32>
    tpu.vector_store %arg6[%c0_14, %c0_15], %36 {strides = array<i32>} : memref<32x8xf32, #tpu.memory_space<vmem>>, vector<32x8xf32>,
    %c0_i32_16 = arith.constant 0 : i32
    %38 = arith.cmpi eq, %arg2, %c0_i32_16 : i32
    %39 = arith.extui %38 : i1 to i32
    %c0_i32_17 = arith.constant 0 : i32
    %40 = arith.cmpi ne, %39, %c0_i32_17 : i32
    scf.if %40 {
      %c0_18 = arith.constant 0 : index
      %c0_19 = arith.constant 0 : index
      %41 = vector.load %arg6[%c0_18, %c0_19] : memref<32x8xf32, #tpu.memory_space<vmem>>, vector<32x8xf32>
      %42 = vector.shape_cast %41 : vector<32x8xf32> to vector<1x32x8xf32>
      %cst_20 = arith.constant dense<0.000000e+00> : vector<1xf32>
      %43 = vector.multi_reduction <add>, %42, %cst_20 [1, 2] : vector<1x32x8xf32> to vector<1xf32>
      %44 = vector.shape_cast %43 : vector<1xf32> to vector<1x1x1xf32>
      %45 = vector.extract %44[0, 0, 0] : f32 from vector<1x1x1xf32>
      %46 = vector.broadcast %45 : f32 to vector<1x1x1xf32>
      %c0_21 = arith.constant 0 : index
      %c0_22 = arith.constant 0 : index
      %c0_23 = arith.constant 0 : index
      %47 = vector.load %arg5[%c0_21, %c0_22, %c0_23] : memref<1x1x1xf32, #tpu.memory_space<vmem>>, vector<1x1x1xf32>
      tpu.vector_store %arg5[%c0_21, %c0_22, %c0_23], %46 {strides = array<i32>} : memref<1x1x1xf32, #tpu.memory_space<vmem>>, vector<1x1x1xf32>,
    } else {
    }
    return
  }
  func.func @transform_0(%arg0: i32, %arg1: i32, %arg2: i32) -> (i32, i32, i32) {
    %c1_i32 = arith.constant 1 : i32
    %0 = arith.muli %arg1, %c1_i32 : i32
    %1 = arith.addi %0, %arg2 : i32
    %c0_i32 = arith.constant 0 : i32
    %c0_i32_0 = arith.constant 0 : i32
    return %arg0, %c0_i32, %1 : i32, i32, i32
  }
  func.func @transform_1(%arg0: i32, %arg1: i32, %arg2: i32) -> (i32, i32, i32) {
    %c1_i32 = arith.constant 1 : i32
    %0 = arith.muli %arg1, %c1_i32 : i32
    %1 = arith.addi %0, %arg2 : i32
    %c0_i32 = arith.constant 0 : i32
    %c0_i32_0 = arith.constant 0 : i32
    return %arg0, %c0_i32, %1 : i32, i32, i32
  }
  func.func @transform_2(%arg0: i32, %arg1: i32, %arg2: i32) -> (i32, i32, i32) {
    %c1_i32 = arith.constant 1 : i32
    %0 = arith.muli %arg0, %c1_i32 : i32
    %1 = arith.addi %0, %arg1 : i32
    %c0_i32 = arith.constant 0 : i32
    %c0_i32_0 = arith.constant 0 : i32
    %c0_i32_1 = arith.constant 0 : i32
    return %1, %c0_i32, %c0_i32_0 : i32, i32, i32
  }
}

</mosaic_0001>

<bundles_post_ra>
// kernel: tpu_custom_call.1
= control target key start
LH: loop header
LB: loop body
LE: loop exit
PB: predicated region body
PF: predicated region fallthrough
CT: control target
= control target key end

     0   :  { %s576_s9 = smov 0   ;;  %s578_s10 = smov 0   ;;  %s710_s0 = inlined_call_operand.vmem [shape: f32[2,32,8], index: 0, kind: input, shape index: {}]   ;;  %s711_s1 = inlined_call_operand.vmem [shape: s32[2,1,8], index: 1, kind: input, shape index: {}]   ;;  %s712_s2 = inlined_call_operand.vmem [shape: f32[2,1,1], index: 2, kind: output, shape index: {}]  }
   0x1   :  { %s580_s11 = smov 0  }
   0x2 LB: > { %s31_s12 = sadd.s32 1, %s553_s10  ;;  %p476_p0 = scmp.ge.s32.totalorder %s557_s11, 1  ;;  %s557_s11 = sphi %s580_s11, %s12_s11   ;;  %s553_s10 = sphi %s578_s10, %s714_s10   ;;  %s549_s9 = sphi %s576_s9, %s713_s9  }
   0x3   : > { %p33_p1 = scmp.ge.s32.totalorder %s31_s12, 2  ;;  %p159_p2 = scmp.lt.s32.totalorder %s557_s11, 3 }
   0x5   : > { %s716_s12 = smov (%p33_p1, %s31_s12), 0  ;;  %p160_p3 = pnand %p476_p0, %p159_p2 }
   0x6   : > { %p192_p4 = scmp.lt.s32.totalorder (!%p160_p3), %s549_s9, 1  ;;  %vm218_vm0 = vcmask (!%p160_p3), 64512   ;;  %v559_v0 = vmov (!%p160_p3), 0.0   ;;  %v228_v23 = vlaneseq (!%p160_p3)  ;;  %vm390_vm9 = vcmask (!%p160_p3), 0  }
   0x7   : > { %163 = sbr.rel (%p160_p3) target bundleno = 297 (0x129), region = 28  ;;  %219 = vst.msk [vmem:[#allocation2] sm:$0xff] (!%p160_p3), %vm218_vm0, %v559_v0  ;;  %220 = vst.msk [vmem:[#allocation2 + $0x8] sm:$0xff] (!%p160_p3), %vm218_vm0, %v559_v0 }
   0x8   : > { %221 = vst.msk [vmem:[#allocation2 + $0x10] sm:$0xff] (!%p160_p3), %vm218_vm0, %v559_v0  ;;  %222 = vst.msk [vmem:[#allocation2 + $0x18] sm:$0xff] (!%p160_p3), %vm218_vm0, %v559_v0  ;;  %v620_v29 = vshrl.u32 (!%p160_p3), %v228_v23, 7  ;;  %v560_v23 = vmov (!%p160_p3), 0.75  }
   0xa   : > { %v625_v37 = vadd.s32 (!%p160_p3), 8, %v620_v29  ;;  %v628_v38 = vadd.s32 (!%p160_p3), 16, %v620_v29  ;;  %v631_v40 = vadd.s32 (!%p160_p3), 24, %v620_v29 }
   0xe   : > { %s718_s9 = smov (!%p192_p4, %s549_s9), 1 }
   0xf   : > { %s482_s13 = sshll.u32 %s718_s9, 5  ;;  %s207_s19 = scalar_lea.vmem %s711_s1, %s718_s9 }
  0x10   : > { %s199_s16 = scalar_lea.vmem %s710_s0, %s482_s13  ;;  %v622_v32 = vld [vmem:[%s207_s19] ss:$0 sm:$0xff]  ;;  %s212_s22 = scalar_lea.vmem %s712_s2, %s718_s9 }
  0x11   : > { %v604_v1 = vld [vmem:[%s199_s16] sm:$0xff]  ;;  %v606_v2 = vld [vmem:[%s199_s16 + $0x8] sm:$0xff]  ;;  %v608_v3 = vld [vmem:[%s199_s16 + $0x10] sm:$0xff]  ;;  %vm237_vm1 = vcmp.eq.s32.totalorder %v620_v29, %v622_v32  ;;  %vm238_vm4 = vcmp.eq.s32.totalorder %v625_v37, %v622_v32  ;;  %vm239_vm6 = vcmp.eq.s32.totalorder %v628_v38, %v622_v32  ;;  %vm240_vm8 = vcmp.eq.s32.totalorder %v631_v40, %v622_v32 }
  0x12   : > { %v610_v4 = vld [vmem:[%s199_s16 + $0x18] sm:$0xff]  ;;  %v241_v5 = vand.u32 2147483647, %v604_v1  ;;  %v242_v6 = vand.u32 2147483647, %v606_v2  ;;  %v309_v46 = vmin.f32 %v604_v1, 0.0 }
  0x13   : > { %v243_v7 = vand.u32 2147483647, %v608_v3  ;;  %v244_v8 = vand.u32 2147483647, %v610_v4  ;;  %v310_v50 = vmin.f32 %v606_v2, 0.0  ;;  %v311_v53 = vmin.f32 %v608_v3, 0.0 }
  0x14   : > { %v245_v9 = vsub.f32 0.0, %v241_v5  ;;  %v246_v10 = vsub.f32 0.0, %v242_v6  ;;  %v312_v59 = vmin.f32 %v610_v4, 0.0  ;;  %v293_v0 = vmax.f32 %v604_v1, 0.0 }
  0x15   : > { %v247_v11 = vsub.f32 0.0, %v243_v7  ;;  %v248_v12 = vsub.f32 0.0, %v244_v8  ;;  %v294_v5 = vmax.f32 %v606_v2, 0.0 }
  0x16   : > { %v249_v13 = vmul.f32 1.442695, %v245_v9  ;;  %v251_v14 = vmul.f32 1.442695, %v246_v10  ;;  %v295_v9 = vmax.f32 %v608_v3, 0.0  ;;  %v297_v10 = vsel %vm237_vm1, %v604_v1, 0.0 }
  0x17   : > { %v253_v15 = vmul.f32 1.442695, %v247_v11  ;;  %v255_v16 = vmul.f32 1.442695, %v248_v12  ;;  %v298_v12 = vsel %vm238_vm4, %v606_v2, 0.0 }
  0x18   : > { %511 = vpow2.f32 %v249_v13  ;;  %v302_v2 = vsub.f32 %v294_v5, %v298_v12 }
  0x19   : > { %513 = vpow2.f32 %v251_v14 }
  0x1a   : > { %515 = vpow2.f32 %v253_v15  ;;  %v299_v15 = vsel %vm239_vm6, %v608_v3, 0.0  ;;  %v337_v3 = vsel %vm237_vm1, 0.25, %v560_v23 }
  0x1b   : > { %517 = vpow2.f32 %v255_v16  ;;  %v296_v16 = vmax.f32 %v610_v4, 0.0 }
  0x22   : > { %v512_v17 = vpop.eup %511 }
  0x23   : > { %v514_v18 = vpop.eup %513  ;;  %v257_v19 = vadd.f32 1.0, %v512_v17  ;;  %v260_v25 = vmul.f32 -0.5, %v512_v17  ;;  %v263_v33 = vand.u32 2147483647, %v512_v17 }
  0x24   : > { %v516_v20 = vpop.eup %515  ;;  %v266_v21 = vadd.f32 1.0, %v514_v18  ;;  %v269_v26 = vmul.f32 -0.5, %v514_v18  ;;  %v272_v35 = vand.u32 2147483647, %v514_v18 }
  0x25   : > { %v518_v22 = vpop.eup %517  ;;  %519 = vlog2.f32 %v257_v19  ;;  %v275_v24 = vadd.f32 1.0, %v516_v20  ;;  %v278_v28 = vmul.f32 -0.5, %v516_v20  ;;  %v261_v30 = vadd.f32 1.0, %v260_v25 }
  0x26   : > { %521 = vlog2.f32 %v266_v21  ;;  %v284_v27 = vadd.f32 1.0, %v518_v22  ;;  %v287_v31 = vmul.f32 -0.5, %v518_v22  ;;  %v270_v34 = vadd.f32 1.0, %v269_v26 }
  0x27   : > { %523 = vlog2.f32 %v275_v24  ;;  %v279_v36 = vadd.f32 1.0, %v278_v28  ;;  %v281_v39 = vand.u32 2147483647, %v516_v20  ;;  %v262_v41 = vmul.f32 %v512_v17, %v261_v30 }
  0x28   : > { %525 = vlog2.f32 %v284_v27  ;;  %v288_v42 = vadd.f32 1.0, %v287_v31  ;;  %vm264_vm2 = vcmp.lt.f32.partialorder %v263_v33, 0.0004427343  ;;  %v271_v44 = vmul.f32 %v514_v18, %v270_v34 }
  0x29   : > { %v290_v45 = vand.u32 2147483647, %v518_v22  ;;  %vm273_vm3 = vcmp.lt.f32.partialorder %v272_v35, 0.0004427343  ;;  %v280_v49 = vmul.f32 %v516_v20, %v279_v36  ;;  %vm282_vm5 = vcmp.lt.f32.partialorder %v281_v39, 0.0004427343 }
  0x2a   : > { %v289_v56 = vmul.f32 %v518_v22, %v288_v42  ;;  %v301_v17 = vsub.f32 %v293_v0, %v297_v10  ;;  %v300_v18 = vsel %vm240_vm8, %v610_v4, 0.0  ;;  %v303_v19 = vsub.f32 %v295_v9, %v299_v15 }
  0x2b   : > { %vm291_vm7 = vcmp.lt.f32.partialorder %v290_v45, 0.0004427343  ;;  %v304_v20 = vsub.f32 %v296_v16, %v300_v18  ;;  %v338_v25 = vsel %vm238_vm4, 0.25, %v560_v23  ;;  %v339_v4 = vsel %vm239_vm6, 0.25, %v560_v23 }
  0x2c   : > { %v340_v33 = vsel %vm240_vm8, 0.25, %v560_v23 }
  0x2f   : > { %v520_v43 = vpop.eup %519 }
  0x30   : > { %v522_v47 = vpop.eup %521  ;;  %v259_v48 = vmul.f32 0.6931472, %v520_v43 }
  0x31   : > { %v524_v51 = vpop.eup %523  ;;  %v268_v52 = vmul.f32 0.6931472, %v522_v47 }
  0x32   : > { %v265_v54 = vsel %vm264_vm2, %v262_v41, %v259_v48  ;;  %v277_v55 = vmul.f32 0.6931472, %v524_v51  ;;  %v526_v57 = vpop.eup %525 }
  0x33   : > { %v274_v58 = vsel %vm273_vm3, %v271_v44, %v268_v52  ;;  %v313_v60 = vsub.f32 %v309_v46, %v265_v54  ;;  %v286_v62 = vmul.f32 0.6931472, %v526_v57  ;;  %v305_v21 = vadd.f32 %v301_v17, %v265_v54  ;;  %v353_v52 = vld [vmem:[#allocation2] sm:$0xff]  ;;  %v355_v57 = vld [vmem:[#allocation2 + $0x10] sm:$0xff] }
  0x34   : > { %v283_v61 = vsel %vm282_vm5, %v280_v49, %v277_v55  ;;  %v314_v63 = vsub.f32 %v310_v50, %v274_v58  ;;  %v306_v22 = vadd.f32 %v302_v2, %v274_v58  ;;  %v354_v55 = vld [vmem:[#allocation2 + $0x8] sm:$0xff] }
  0x35   : > { %v315_v6 = vsub.f32 %v311_v53, %v283_v61  ;;  %v317_v7 = vmul.f32 1.442695, %v313_v60  ;;  %v292_v8 = vsel %vm291_vm7, %v289_v56, %v286_v62  ;;  %v307_v24 = vadd.f32 %v303_v19, %v283_v61  ;;  %v356_v62 = vld [vmem:[#allocation2 + $0x18] sm:$0xff] }
  0x36   : > { %v319_v11 = vmul.f32 1.442695, %v314_v63  ;;  %v316_v13 = vsub.f32 %v312_v59, %v292_v8  ;;  %v308_v27 = vadd.f32 %v304_v20, %v292_v8  ;;  %v341_v28 = vmul.f32 %v337_v3, %v305_v21 }
  0x37   : > { %527 = vpow2.f32 %v317_v7  ;;  %v321_v14 = vmul.f32 1.442695, %v315_v6  ;;  %v342_v34 = vmul.f32 %v338_v25, %v306_v22  ;;  %v343_v39 = vmul.f32 %v339_v4, %v307_v24 }
  0x38   : > { %529 = vpow2.f32 %v319_v11  ;;  %v323_v1 = vmul.f32 1.442695, %v316_v13  ;;  %v344_v46 = vmul.f32 %v340_v33, %v308_v27 }
  0x39   : > { %531 = vpow2.f32 %v321_v14 }
  0x3a   : > { %533 = vpow2.f32 %v323_v1 }
  0x41   : > { %v528_v26 = vpop.eup %527 }
  0x42   : > { %v530_v30 = vpop.eup %529  ;;  %v325_v31 = vsub.f32 1.0, %v528_v26 }
  0x43   : > { %v532_v35 = vpop.eup %531  ;;  %v326_v36 = vsub.f32 1.0, %v530_v30 }
  0x44   : > { %v327_v41 = vsub.f32 1.0, %v532_v35  ;;  %v329_v42 = vsel %vm237_vm1, %v325_v31, %v528_v26  ;;  %v534_v43 = vpop.eup %533 }
  0x45   : > { %v330_v44 = vsel %vm238_vm4, %v326_v36, %v530_v30  ;;  %v333_v45 = vmul.f32 %v329_v42, %v329_v42  ;;  %v345_v47 = vadd.f32 %v341_v28, %v329_v42  ;;  %v328_v48 = vsub.f32 1.0, %v534_v43 }
  0x46   : > { %v331_v49 = vsel %vm239_vm6, %v327_v41, %v532_v35  ;;  %v334_v50 = vmul.f32 %v330_v44, %v330_v44  ;;  %v346_v51 = vadd.f32 %v342_v34, %v330_v44 }
  0x47   : > { %v335_v53 = vmul.f32 %v331_v49, %v331_v49  ;;  %v347_v54 = vadd.f32 %v343_v39, %v331_v49  ;;  %v349_v29 = vmul.f32 %v345_v47, %v333_v45  ;;  %v332_v37 = vsel %vm240_vm8, %v328_v48, %v534_v43 }
  0x48   : > { %v350_v56 = vmul.f32 %v346_v51, %v334_v50  ;;  %v336_v58 = vmul.f32 %v332_v37, %v332_v37  ;;  %v348_v59 = vadd.f32 %v344_v46, %v332_v37 }
  0x49   : > { %v351_v60 = vmul.f32 %v347_v54, %v335_v53  ;;  %v357_v61 = vadd.f32 %v353_v52, %v349_v29 }
  0x4a   : > { %v358_v38 = vadd.f32 %v354_v55, %v350_v56  ;;  %v352_v63 = vmul.f32 %v348_v59, %v336_v58 }
  0x4b   : > { %v359_v0 = vadd.f32 %v355_v57, %v351_v60  ;;  %362 = vst.msk [vmem:[#allocation2] sm:$0xff] %vm218_vm0, %v357_v61 }
  0x4c   : > { %363 = vst.msk [vmem:[#allocation2 + $0x8] sm:$0xff] %vm218_vm0, %v358_v38  ;;  %v360_v5 = vadd.f32 %v356_v62, %v352_v63 }
  0x4d   : > { %364 = vst.msk [vmem:[#allocation2 + $0x10] sm:$0xff] %vm218_vm0, %v359_v0 }
  0x4e   : > { %365 = vst.msk [vmem:[#allocation2 + $0x18] sm:$0xff] %vm218_vm0, %v360_v5 }
  0x52   : > { %v369_v32 = vld [vmem:[#allocation2] sm:$0xff] }
  0x53   : > { %v370_v40 = vld [vmem:[#allocation2 + $0x8] sm:$0xff]  ;;  %v373_v6 = vsel %vm218_vm0, %v369_v32, 0.0 }
  0x54   : > { %v371_v7 = vld [vmem:[#allocation2 + $0x10] sm:$0xff]  ;;  %v374_v8 = vsel %vm218_vm0, %v370_v40, 0.0 }
  0x55   : > { %v375_v9 = vadd.f32 %v374_v8, %v373_v6  ;;  %v376_v10 = vsel %vm218_vm0, %v371_v7, 0.0  ;;  %v372_v11 = vld [vmem:[#allocation2 + $0x18] sm:$0xff] }
  0x56   : > { %v378_v13 = vsel %vm218_vm0, %v372_v11, 0.0 }
  0x57   : > { %v377_v12 = vadd.f32 %v376_v10, %v375_v9 }
  0x59   : > { %v379_v14 = vadd.f32 %v378_v13, %v377_v12 }
  0x5b   : > { %380 = vadd.xlane.f32.xlu0 %v379_v14 }
  0xe8   : > { %v381_v15 = vpop.xlane.xlu0 %380 }
  0xe9   : > { %v382_v16 = vrot.slane %v381_v15, 4 }
  0xeb   : > { %v383_v17 = vadd.f32 %v382_v16, %v381_v15 }
  0xed   : > { %v384_v1 = vrot.slane %v383_v17, 2 }
  0xef   : > { %v385_v18 = vadd.f32 %v384_v1, %v383_v17 }
  0xf1   : > { %v386_v2 = vrot.slane %v385_v18, 1 }
  0xf3   : > { %v387_v19 = vadd.f32 %v386_v2, %v385_v18 }
  0xf5   : > { %483 = vpush %v387_v19 }
 0x126   : > { %s484_s23 = spop %483 }
 0x127   : > { %v389_v20 = vstv %s484_s23 }
 0x128   : > { %391 = vst.msk [vmem:[%s212_s22] sm:$0x1] %vm390_vm9, %v389_v20 }
 0x129 PF: > { %s12_s11 = sadd.s32 1, %s557_s11   ;;  %s713_s9 = smov %s553_s10 }
 0x12a   : > { %p9_p5 = scmp.ge.s32.totalorder %s12_s11, 4   ;;  %s714_s10 = smov %s716_s12 }
 0x12c   :  { %11 = sbr.rel (!%p9_p5) target bundleno = 2 (0x2), region = 69 }

</bundles_post_ra>
